<compile_context>
chip_gen: v5e
topology: v5e:2x2
jax: 0.10.0
libtpu: 0.0.40
codegen_flags: <defaults>
</compile_context>

<pallas_src>
import functools

import jax
import jax.numpy as jnp
from jax.experimental import pallas as pl
from jax.experimental.pallas import tpu as pltpu


def _focal_loss_kernel(
    logits_ref,      # (TB, C) native dtype
    targets_ref,     # (TB, 1) int32
    out_ref,         # (1, 1) f32 in SMEM, resident across the reduction axis
    *,
    alpha,
    gamma,
    total_rows,
    tb,
    tiles_per_part,
    mask_needed,
):
    p = pl.program_id(0)   # TensorCore partition (parallel axis)
    t = pl.program_id(1)   # reduction step within partition

    @pl.when(t == 0)
    def _():
        out_ref[0, 0] = jnp.float32(0.0)

    x = logits_ref[...].astype(jnp.float32)        # (TB, C) — f32 math in-kernel
    tgt = targets_ref[...]                         # (TB, 1) int32

    # numerically stable log-sum-exp over the class (lane) axis
    m = jnp.max(x, axis=-1, keepdims=True)         # (TB, 1)
    e = jnp.exp(x - m)                             # (TB, C) — single wide EUP pass
    sumexp = jnp.sum(e, axis=-1, keepdims=True)    # (TB, 1)

    # gather the target logit via one masked row-sum (no (B, C) one-hot temp);
    # this is the only remaining (TB, C) compare+select in the steady state.
    cls_idx = jax.lax.broadcasted_iota(jnp.int32, x.shape, 1)
    tgt_logit = jnp.sum(jnp.where(cls_idx == tgt, x, 0.0), axis=-1, keepdims=True)

    # per-sample cross entropy; the max(., 0) clamps -eps rounding (a tiny,
    # intentional deviation from the reference — do not "fix").
    ce = jnp.maximum(jnp.log(sumexp) + (m - tgt_logit), 0.0)   # (TB, 1)
    pt = jnp.exp(-ce)                              # (TB, 1) EUP; ce>=0 => pt in (0, 1]
    w = 1.0 - pt                                   # in [0, 1); no clip needed

    g = float(gamma)
    if g == 2.0:
        wg = w * w                                 # VPU muls, no pow / no NaN risk
    elif g == 1.0:
        wg = w
    elif g == 0.0:
        wg = jnp.ones_like(w)
    elif g == int(g) and g > 0:
        wg = w
        for _ in range(int(g) - 1):
            wg = wg * w
    else:
        wg = w ** jnp.float32(g)                   # non-negative base: safe

    focal = jnp.float32(alpha) * wg * ce           # (TB, 1)
    tile_sum = jnp.sum(focal)

    if mask_needed:
        row0 = (p * tiles_per_part + t) * tb
        is_tail = row0 + tb > total_rows

        @pl.when(jnp.logical_not(is_tail))
        def _():
            out_ref[0, 0] += tile_sum

        @pl.when(is_tail)
        def _():
            # Rows past the real batch (padded tail / duplicated clamp tiles)
            # may hold garbage (Inf/NaN after exp/log); the select drops them
            # (selecting 0.0 is NaN-safe: no multiply with the bad lane).
            row_idx = row0 + jax.lax.broadcasted_iota(jnp.int32, focal.shape, 0)
            out_ref[0, 0] += jnp.sum(jnp.where(row_idx < total_rows, focal, 0.0))
    else:
        out_ref[0, 0] += tile_sum


def _vmem_capacity_bytes():
    try:
        info = pltpu.get_tpu_info()
        v = int(getattr(info, "vmem_capacity_bytes", 0))
        if v > 0:
            return v
    except Exception:
        pass
    return 64 * 1024 * 1024        # conservative (v7x-sized) fallback


def _tensorcores_per_device():
    # Only chips where a single JAX device spans 2 TensorCores benefit from a
    # leading 'parallel' grid axis; on single-TC v5e/v6e it is pure overhead
    # (extra index math + one duplicated tail-tile DMA), so emit it only there.
    try:
        kind = jax.devices()[0].device_kind.lower()
    except Exception:
        return 1
    if "lite" in kind or "v5e" in kind or "v6e" in kind:
        return 1
    for tag in ("v4", "v5p", "v7", "7x"):
        if tag in kind:
            return 2
    return 1


def focal_loss(logits, targets, *, alpha=1.0, gamma=2.0, reduction="mean",
               max_rows_per_tile=None):
    """logits: (B, C); targets: (B,) int. Returns the scalar focal loss."""
    if reduction not in ("mean", "sum"):
        raise ValueError("Pallas focal_loss supports reduction='mean' or 'sum' only")

    B, C = logits.shape
    targets_2d = targets.astype(jnp.int32).reshape(B, 1)

    # --- tile-size selection ------------------------------------------------
    # Per batch row we stream C*itemsize bytes of logits plus a (., 1) int32
    # target that lane-pads to 128 lanes in VMEM (512 B per row per buffer).
    itemsize = jnp.dtype(logits.dtype).itemsize
    row_bytes = C * itemsize + 512
    vmem_bytes = _vmem_capacity_bytes()
    tile_budget = max(1 << 20, vmem_bytes // 8)    # per buffer; x2 buffers ~ vmem/4
    # TODO(synk): vocab-scale C (where even one (8, C) tile blows the budget)
    # would need a class-axis grid dimension with an online log-sum-exp.
    # TODO(synk): for small C (<128) a lane-packing layout (several batch rows
    # per vreg row) would recover the idle lanes; not implemented.
    if B <= 8:
        tb = B                                      # full-dim block is always legal
    else:
        tb = max(8, (tile_budget // row_bytes) // 8 * 8)
        tb = min(tb, (B // 8) * 8)
    if max_rows_per_tile is not None:
        tb = max(1, min(tb, int(max_rows_per_tile)))
        if B > 8:
            tb = max(8, (tb // 8) * 8)

    total_tiles = pl.cdiv(B, tb)
    num_parallel = min(_tensorcores_per_device(), total_tiles)
    tiles_per_part = pl.cdiv(total_tiles, num_parallel)
    # Static: does any grid step touch rows past the real batch?
    mask_needed = (num_parallel * tiles_per_part * tb) > B

    if num_parallel == 1:
        def in_idx(p, t):                           # clamp-free on single-TC chips
            return (t, 0)
    else:
        def in_idx(p, t):
            # Clamp so duplicated trailing steps never DMA out of bounds; their
            # contribution is masked to zero inside the kernel.
            return (jnp.minimum(p * tiles_per_part + t, total_tiles - 1), 0)

    kernel = functools.partial(
        _focal_loss_kernel,
        alpha=float(alpha),
        gamma=float(gamma),
        total_rows=B,
        tb=tb,
        tiles_per_part=tiles_per_part,
        mask_needed=mask_needed,
    )

    # Double-buffered logits + lane-padded targets, plus slack for the rest.
    vmem_limit = int(min(vmem_bytes, max(32 << 20, 2 * tb * row_bytes + (8 << 20))))

    partials = pl.pallas_call(
        kernel,
        out_shape=jax.ShapeDtypeStruct((num_parallel, 1), jnp.float32),
        grid_spec=pltpu.PrefetchScalarGridSpec(
            num_scalar_prefetch=0,
            grid=(num_parallel, tiles_per_part),
            in_specs=[
                pl.BlockSpec((tb, C), in_idx),      # logits tile (native dtype)
                pl.BlockSpec((tb, 1), in_idx),      # targets tile
            ],
            out_specs=pl.BlockSpec(
                (1, 1), lambda p, t: (p, 0), memory_space=pltpu.SMEM
            ),
        ),
        compiler_params=pltpu.CompilerParams(
            # TODO(synk): on v7x, verify via xprof that the leading axis really
            # shards across both TensorCores; if not, switch to
            # pltpu.CORE_PARALLEL or an explicit pl.core_map split.
            dimension_semantics=("parallel", "arbitrary"),
            vmem_limit_bytes=vmem_limit,
        ),
    )(logits, targets_2d)

    total = jnp.sum(partials)
    if reduction == "mean":
        return total / jnp.float32(B)
    return total


def _focal_loss_ref(logits, targets, alpha=1.0, gamma=2.0, reduction="mean"):
    # pure-JAX reference matching F.cross_entropy + focal weighting
    logp = jax.nn.log_softmax(logits.astype(jnp.float32), axis=-1)
    ce = -jnp.take_along_axis(logp, targets[:, None].astype(jnp.int32), axis=-1)[:, 0]
    pt = jnp.exp(-ce)
    focal = alpha * (1.0 - pt) ** gamma * ce
    return jnp.mean(focal) if reduction == "mean" else jnp.sum(focal)


if __name__ == "__main__":
    key = jax.random.PRNGKey(0)
    k_logits, k_targets = jax.random.split(key)

    # Primary small-shape check (matches the module's (batch, num_classes) contract).
    B, C = 8, 32
    logits = jax.random.normal(k_logits, (B, C), dtype=jnp.float32)
    targets = jax.random.randint(k_targets, (B,), 0, C, dtype=jnp.int32)

    loss = jax.block_until_ready(
        focal_loss(logits, targets, alpha=1.0, gamma=2.0, reduction="mean"))
    ref = _focal_loss_ref(logits, targets, alpha=1.0, gamma=2.0, reduction="mean")
    assert jnp.allclose(loss, ref, atol=1e-5, rtol=1e-5), (loss, ref)

    loss_sum = jax.block_until_ready(
        focal_loss(logits, targets, alpha=1.0, gamma=2.0, reduction="sum"))
    ref_sum = _focal_loss_ref(logits, targets, reduction="sum")
    assert jnp.allclose(loss_sum, ref_sum, atol=1e-5, rtol=1e-5), (loss_sum, ref_sum)

    # Multi-tile + padded-tail path (B not a multiple of the tile), bf16 logits.
    k3, k4 = jax.random.split(k_logits)
    B2, C2 = 37, 40
    logits2 = jax.random.normal(k3, (B2, C2), dtype=jnp.bfloat16)
    targets2 = jax.random.randint(k4, (B2,), 0, C2, dtype=jnp.int32)
    loss2 = jax.block_until_ready(
        focal_loss(logits2, targets2, reduction="mean", max_rows_per_tile=16))
    ref2 = _focal_loss_ref(logits2, targets2, reduction="mean")
    assert jnp.allclose(loss2, ref2, atol=1e-4, rtol=1e-4), (loss2, ref2)

    print("KERNEL_OK")
</pallas_src>

<mosaic_0001>
module attributes {stable_mosaic.version = 11 : i64} {
  func.func @_focal_loss_kernel(%arg0: i32, %arg1: i32, %arg2: memref<8x32xf32, #tpu.memory_space<vmem>>, %arg3: memref<8x1xi32, #tpu.memory_space<vmem>>, %arg4: memref<1x1xf32, #tpu.memory_space<smem>>) attributes {dimension_semantics = [#tpu.dimension_semantics<parallel>, #tpu.dimension_semantics<arbitrary>], iteration_bounds = array<i64: 1, 1>, scalar_prefetch = 0 : i64, scratch_operands = 0 : i64, tpu.core_type = #tpu.core_type<tc>, window_params = [{transform_indices = @transform_0, window_bounds = array<i64: 8, 32>}, {transform_indices = @transform_1, window_bounds = array<i64: 8, 1>}, {transform_indices = @transform_2, window_bounds = array<i64: 1, 1>}]} {
    %c0_i32 = arith.constant 0 : i32
    %0 = arith.cmpi eq, %arg1, %c0_i32 : i32
    %1 = arith.extui %0 : i1 to i32
    %c0_i32_0 = arith.constant 0 : i32
    %2 = arith.cmpi ne, %1, %c0_i32_0 : i32
    scf.if %2 {
      %cst_16 = arith.constant 0.000000e+00 : f32
      %c0_17 = arith.constant 0 : index
      %c0_18 = arith.constant 0 : index
      %40 = memref.load %arg4[%c0_17, %c0_18] : memref<1x1xf32, #tpu.memory_space<smem>>
      memref.store %cst_16, %arg4[%c0_17, %c0_18] : memref<1x1xf32, #tpu.memory_space<smem>>
    } else {
    }
    %c0 = arith.constant 0 : index
    %c0_1 = arith.constant 0 : index
    %3 = vector.load %arg2[%c0, %c0_1] : memref<8x32xf32, #tpu.memory_space<vmem>>, vector<8x32xf32>
    %c0_2 = arith.constant 0 : index
    %c0_3 = arith.constant 0 : index
    %4 = vector.load %arg3[%c0_2, %c0_3] : memref<8x1xi32, #tpu.memory_space<vmem>>, vector<8x1xi32>
    %cst = arith.constant dense<0xFF800000> : vector<8xf32>
    %5 = vector.multi_reduction <maximumf>, %3, %cst [1] : vector<8x32xf32> to vector<8xf32>
    %6 = vector.shape_cast %5 : vector<8xf32> to vector<8x1xf32>
    %7 = vector.broadcast %6 : vector<8x1xf32> to vector<8x32xf32>
    %8 = arith.subf %3, %7 : vector<8x32xf32>
    %9 = math.exp %8 : vector<8x32xf32>
    %cst_4 = arith.constant dense<0.000000e+00> : vector<8xf32>
    %10 = vector.multi_reduction <add>, %9, %cst_4 [1] : vector<8x32xf32> to vector<8xf32>
    %11 = vector.shape_cast %10 : vector<8xf32> to vector<8x1xf32>
    %12 = tpu.iota {dimensions = array<i32: 1>} : vector<8x32xi32>
    %13 = vector.broadcast %4 : vector<8x1xi32> to vector<8x32xi32>
    %14 = arith.cmpi eq, %12, %13 : vector<8x32xi32>
    %cst_5 = arith.constant 0.000000e+00 : f32
    %15 = vector.broadcast %cst_5 : f32 to vector<8x32xf32>
    %16 = arith.select %14, %3, %15 : vector<8x32xi1>, vector<8x32xf32>
    %cst_6 = arith.constant dense<0.000000e+00> : vector<8xf32>
    %17 = vector.multi_reduction <add>, %16, %cst_6 [1] : vector<8x32xf32> to vector<8xf32>
    %18 = vector.shape_cast %17 : vector<8xf32> to vector<8x1xf32>
    %19 = math.log %11 : vector<8x1xf32>
    %20 = arith.subf %6, %18 : vector<8x1xf32>
    %21 = arith.addf %19, %20 : vector<8x1xf32>
    %cst_7 = arith.constant 0.000000e+00 : f32
    %22 = vector.broadcast %cst_7 : f32 to vector<8x1xf32>
    %23 = arith.maximumf %21, %22 : vector<8x1xf32>
    %cst_8 = arith.constant 0.000000e+00 : f32
    %24 = vector.broadcast %cst_8 : f32 to vector<8x1xf32>
    %25 = arith.subf %24, %23 : vector<8x1xf32>
    %26 = math.exp %25 : vector<8x1xf32>
    %cst_9 = arith.constant 1.000000e+00 : f32
    %27 = vector.broadcast %cst_9 : f32 to vector<8x1xf32>
    %28 = arith.subf %27, %26 : vector<8x1xf32>
    %29 = arith.mulf %28, %28 : vector<8x1xf32>
    %cst_10 = arith.constant 1.000000e+00 : f32
    %30 = vector.broadcast %cst_10 : f32 to vector<8x1xf32>
    %31 = arith.mulf %30, %29 : vector<8x1xf32>
    %32 = arith.mulf %31, %23 : vector<8x1xf32>
    %33 = vector.shape_cast %32 : vector<8x1xf32> to vector<1x8x1xf32>
    %cst_11 = arith.constant dense<0.000000e+00> : vector<1xf32>
    %34 = vector.multi_reduction <add>, %33, %cst_11 [1, 2] : vector<1x8x1xf32> to vector<1xf32>
    %35 = vector.shape_cast %34 : vector<1xf32> to vector<1x1x1xf32>
    %36 = vector.extract %35[0, 0, 0] : f32 from vector<1x1x1xf32>
    %c0_12 = arith.constant 0 : index
    %c0_13 = arith.constant 0 : index
    %37 = memref.load %arg4[%c0_12, %c0_13] : memref<1x1xf32, #tpu.memory_space<smem>>
    %38 = arith.addf %37, %36 : f32
    %c0_14 = arith.constant 0 : index
    %c0_15 = arith.constant 0 : index
    %39 = memref.load %arg4[%c0_14, %c0_15] : memref<1x1xf32, #tpu.memory_space<smem>>
    memref.store %38, %arg4[%c0_14, %c0_15] : memref<1x1xf32, #tpu.memory_space<smem>>
    return
  }
  func.func @transform_0(%arg0: i32, %arg1: i32) -> (i32, i32) {
    %c0_i32 = arith.constant 0 : i32
    %c0_i32_0 = arith.constant 0 : i32
    return %arg1, %c0_i32 : i32, i32
  }
  func.func @transform_1(%arg0: i32, %arg1: i32) -> (i32, i32) {
    %c0_i32 = arith.constant 0 : i32
    %c0_i32_0 = arith.constant 0 : i32
    return %arg1, %c0_i32 : i32, i32
  }
  func.func @transform_2(%arg0: i32, %arg1: i32) -> (i32, i32) {
    %c0_i32 = arith.constant 0 : i32
    %c0_i32_0 = arith.constant 0 : i32
    return %arg0, %c0_i32 : i32, i32
  }
}

</mosaic_0001>

<bundles_post_ra>
// kernel: tpu_custom_call.1
= control target key start
LH: loop header
LB: loop body
LE: loop exit
PB: predicated region body
PF: predicated region fallthrough
CT: control target
= control target key end

     0   :  { %vm20_vm0 = vcmask 261120   ;;  %s136_s0 = inlined_call_operand.vmem [shape: f32[8,32], index: 0, kind: input, shape index: {}]   ;;  %s137_s1 = inlined_call_operand.vmem [shape: s32[8,1], index: 1, kind: input, shape index: {}]   ;;  %s138_s2 = inlined_call_operand.hbm [shape: f32[1,1], index: 2, kind: output, shape index: {}]  }
   0x1   :  { %v18_v0 = vld [vmem:[%s136_s0] sm:$0xff] }
   0x2   :  { %7 = vsyncpa [#allocation3], 0  ;;  %v21_v1 = vsel %vm20_vm0, %v18_v0, -inf  ;;  %v107_v2 = vmov 0   ;;  %v19_v3 = vld [vmem:[%s137_s1] sm:$0xff]  ;;  %v30_v9 = vlaneseq  ;;  %vm51_vm2 = vcmask 7168  }
   0x3   :  { %86 = vset.pattern.permute.xlu0 %v107_v2  ;;  %s71_s13 = sshll.u32 %s138_s2, 4  ;;  %s108_s15 = smov [#allocation2]   ;;  %s72_s13 = int_to_ptr.hbm [resolvable:$true] %s71_s13 }
   0x4   :  { %22 = vmax.xlane.f32.xlu0 %v21_v1  ;;  %v31_v10 = vand.u32 127, %v30_v9 }
  0x18   :  { %33 = vperm.xlu0 %86, %v19_v3  }
  0x77   :  { %v23_v4 = vpop.xlane.xlu0 %22 }
  0x78   :  { %v24_v5 = vsub.f32 %v18_v0, %v23_v4 }
  0x7a   :  { %v25_v6 = vmul.f32 1.442695, %v24_v5 }
  0x7c   :  { %87 = vpow2.f32 %v25_v6 }
  0x82   :  { %v88_v7 = vpop.eup %87 }
  0x83   :  { %v27_v8 = vsel %vm20_vm0, %v88_v7, 0.0 }
  0x84   :  { %28 = vadd.xlane.f32.xlu1 %v27_v8 }
  0x8a   :  { %v34_v11 = vpop.permute.xlu0 %33 }
  0x8b   :  { %vm35_vm1 = vcmp.eq.s32.totalorder %v31_v10, %v34_v11 }
  0x8c   :  { %v36_v12 = vsel %vm35_vm1, %v18_v0, 0.0 }
  0x8d   :  { %v37_v13 = vsel %vm20_vm0, %v36_v12, 0.0 }
  0x8e   :  { %38 = vadd.xlane.f32.xlu1 %v37_v13 }
  0xf7   :  { %v29_v14 = vpop.xlane.xlu1 %28 }
  0xf8   :  { %89 = vlog2.f32 %v29_v14 }
  0xfe   :  { %v90_v15 = vpop.eup %89 }
  0xff   :  { %v41_v17 = vmul.f32 0.6931472, %v90_v15 }
 0x101   :  { %v39_v16 = vpop.xlane.xlu1 %38 }
 0x102   :  { %v42_v18 = vsub.f32 %v23_v4, %v39_v16 }
 0x104   :  { %v43_v19 = vadd.f32 %v42_v18, %v41_v17 }
 0x106   :  { %v44_v20 = vmax.f32 %v43_v19, 0.0 }
 0x108   :  { %v45_v21 = vsub.f32 0.0, %v44_v20 }
 0x10a   :  { %v46_v22 = vmul.f32 1.442695, %v45_v21 }
 0x10c   :  { %91 = vpow2.f32 %v46_v22 }
 0x112   :  { %v92_v23 = vpop.eup %91 }
 0x113   :  { %v48_v24 = vsub.f32 1.0, %v92_v23 }
 0x115   :  { %v49_v25 = vmul.f32 %v48_v24, %v48_v24 }
 0x117   :  { %v50_v26 = vmul.f32 %v49_v25, %v44_v20 }
 0x119   :  { %v52_v27 = vsel %vm51_vm2, %v50_v26, 0.0 }
 0x11a   :  { %53 = vadd.xlane.f32.xlu2 %v52_v27 }
 0x18d   :  { %v54_v28 = vpop.xlane.xlu2 %53 }
 0x18e   :  { %v55_v29 = vrot.slane %v54_v28, 4 }
 0x190   :  { %v56_v30 = vadd.f32 %v55_v29, %v54_v28 }
 0x192   :  { %v57_v31 = vrot.slane %v56_v30, 2 }
 0x194   :  { %v58_v32 = vadd.f32 %v57_v31, %v56_v30 }
 0x196   :  { %v59_v33 = vrot.slane %v58_v32, 1 }
 0x198   :  { %v60_v34 = vadd.f32 %v59_v33, %v58_v32 }
 0x19a   :  { %81 = vpush %v60_v34 }
 0x1cb   :  { %s82_s14 = spop %81 }
 0x1cc   :  { %65 = sst [smem:[#allocation2]] %s82_s14 }
 0x1cd   :  { %74 = dma.smem_to_hbm %s108_s15, 16, %s72_s13, [#allocation3]  }
 0x1ce   :  { %105 = dma.done.wait [#allocation3], 16  }
 0x1cf   :  { %106 = vsyncadd [#allocation3], 4294967280 }
 0x1d0   :  { %79 = sfence }
 0x1d1   :  { %80 = vsyncpa [#allocation3], 1 }

</bundles_post_ra>
